<compile_context>
chip_gen: v7x
topology: tpu7x:2x2x1
jax: 0.10.0
libtpu: 0.0.40
codegen_flags: <defaults>
</compile_context>

<pallas_src>
import functools
import math

import jax
import jax.numpy as jnp
from jax.experimental import pallas as pl
from jax.experimental.pallas import tpu as pltpu


def _round_up(x, m):
    return ((x + m - 1) // m) * m


def _pick_tile(padded, candidates):
    for t in candidates:
        if padded % t == 0:
            return t
    return candidates[-1]


def _tpu_generation_params():
    """(mxu_row_align, vmem_capacity_bytes) for the local TPU generation."""
    try:
        kind = jax.devices()[0].device_kind.lower()
    except Exception:
        kind = ""
    # v2-v5 use 128x128 MXU tiles; v6e/v7x use 256x256.
    mxu_align = 128 if any(t in kind for t in ("v2", "v3", "v4", "v5")) else 256
    try:
        vmem_cap = int(pltpu.get_tpu_info().vmem_capacity_bytes)
    except Exception:
        vmem_cap = 64 << 20          # conservative fallback (v7x per-TC size)
    return mxu_align, vmem_cap


def gcn_kernel(x_ref, wt_ref, adj_ref, out_ref, support_ref, *, tm, adj_resident):
    """Fused GraphConvolution hot path.

    x_ref       : (N_pad, TF)       bf16  column slab of input
    wt_ref      : (out_pad, N_pad)  bf16  weight, pre-transposed (resident)
    adj_ref     : (M_pad, out_pad)  bf16  full adj (resident)        [adj_resident]
                  (TM,    out_pad)  bf16  row slab of adj             [otherwise]
    out_ref     : (TM, TF)                output tile
    support_ref : (out_pad, TF)     bf16  scratch, reused across the M axis
    """
    mi = pl.program_id(1)

    # support_T = W.T @ x for this F column: computed once (first M step of the
    # column), cast to bf16 once, reused by every subsequent M tile.
    @pl.when(mi == 0)
    def _():
        support_ref[...] = jnp.dot(
            wt_ref[...], x_ref[...],
            preferred_element_type=jnp.float32).astype(support_ref.dtype)

    if adj_resident:
        row0 = pl.multiple_of(mi * tm, tm)
        adj_tile = adj_ref[pl.ds(row0, tm), :]
    else:
        adj_tile = adj_ref[...]

    # output tile = adj_tile @ support_T  (bf16 MXU operands, f32 accumulation)
    out = jnp.dot(adj_tile, support_ref[...], preferred_element_type=jnp.float32)
    out_ref[...] = jnp.maximum(out, 0.0).astype(out_ref.dtype)     # act = relu


def graph_convolution_forward(inp, adj, weight):
    """JAX wrapper reproducing GraphConvolution.forward (bias=None, act=relu).

    Dropout is applied in eval mode (identity).
    # TODO(synk): training-mode stochastic dropout mask not implemented.
    """
    if inp.ndim == 3:
        n, seq, f = inp.shape
        x2d = inp.reshape(n * seq, f)          # == torch flatten(0, 1)
    else:
        x2d = inp

    N, F = x2d.shape
    M, out_features = adj.shape[0], weight.shape[1]
    assert N == weight.shape[0], "module requires num rows of input == in_features"
    assert adj.shape[1] == out_features

    mxu_align, vmem_cap = _tpu_generation_params()
    out_itemsize = jnp.dtype(inp.dtype).itemsize

    # ---- generation-aware padding (zero padding is exact) --------------------
    N_pad = _round_up(N, 128)                        # contraction dim of matmul #1
    out_pad = _round_up(out_features, mxu_align)     # contraction dim of matmul #2
    F_pad = _round_up(F, 256)                        # lane dim of output (TF >= 256)
    M_pad = _round_up(M, mxu_align)                  # MXU-row dim of matmul #2

    TF = _pick_tile(F_pad, (512, 256))               # lane-dense output tiles
    if F_pad // TF < 2 and TF > 256 and F_pad % (TF // 2) == 0:
        TF //= 2                                     # >=2 F tiles -> both v7x cores busy
    TM = _pick_tile(M_pad, (256, 128))               # >=128 rows into the MXU

    # adj stays fully resident in VMEM (read from HBM exactly once) when small.
    adj_resident = 2 * (M_pad * out_pad * 2) <= min(16 << 20, vmem_cap // 4)

    # ---- pad + cast (one fused op per array; weight pre-transposed so both
    # in-kernel dots are canonical (M,K)x(K,N) with no XLU transpose) ----------
    x_pad = jnp.pad(x2d.astype(jnp.bfloat16), ((0, N_pad - N), (0, F_pad - F)))
    wt_pad = jnp.pad(weight.T.astype(jnp.bfloat16),
                     ((0, out_pad - out_features), (0, N_pad - N)))
    adj_pad = jnp.pad(adj.astype(jnp.bfloat16),
                      ((0, M_pad - M), (0, out_pad - out_features)))

    grid = (F_pad // TF, M_pad // TM)                # F outer, M inner (scratch reuse)

    if adj_resident:
        adj_spec = pl.BlockSpec((M_pad, out_pad), lambda fi, mi: (0, 0))
        adj_reads = 1
    else:
        adj_spec = pl.BlockSpec((TM, out_pad), lambda fi, mi: (mi, 0))
        adj_reads = grid[0]                          # re-streamed once per F column

    flops = 2 * out_pad * N_pad * F_pad + 2 * M_pad * out_pad * F_pad
    bytes_accessed = (2 * (N_pad * F_pad + out_pad * N_pad)
                      + 2 * M_pad * out_pad * adj_reads
                      + out_itemsize * M_pad * F_pad)

    # VMEM budget: double-buffered blocks + resident bf16 support scratch.
    adj_block = (M_pad if adj_resident else TM) * out_pad * 2
    vmem_need = (2 * (N_pad * TF * 2 + out_pad * N_pad * 2 + adj_block
                      + TM * TF * out_itemsize)
                 + out_pad * TF * 2)
    vmem_limit = int(min(max(vmem_need + (8 << 20), 32 << 20),
                         int(0.85 * vmem_cap)))

    kernel = functools.partial(gcn_kernel, tm=TM, adj_resident=adj_resident)

    out_full = pl.pallas_call(
        kernel,
        out_shape=jax.ShapeDtypeStruct((M_pad, F_pad), inp.dtype),
        grid_spec=pltpu.PrefetchScalarGridSpec(
            num_scalar_prefetch=0,
            grid=grid,
            in_specs=[
                pl.BlockSpec((N_pad, TF), lambda fi, mi: (0, fi)),
                pl.BlockSpec((out_pad, N_pad), lambda fi, mi: (0, 0)),
                adj_spec,
            ],
            out_specs=pl.BlockSpec((TM, TF), lambda fi, mi: (mi, fi)),
            scratch_shapes=[pltpu.VMEM((out_pad, TF), jnp.bfloat16)],
        ),
        compiler_params=pltpu.CompilerParams(
            dimension_semantics=("parallel", "arbitrary"),
            vmem_limit_bytes=vmem_limit),
        cost_estimate=pl.CostEstimate(
            flops=flops, transcendentals=0, bytes_accessed=bytes_accessed),
    )(x_pad, wt_pad, adj_pad)

    out = out_full[:M, :F]
    if inp.ndim == 3:
        out = out.reshape(n, seq, -1)          # == torch .view(n, seq, -1)
    return out


if __name__ == "__main__":
    key = jax.random.PRNGKey(0)
    k_w, k_x, k_a = jax.random.split(key, 3)

    # Small shapes consistent with the forward's constraint (in_features == number
    # of rows of `input`), deliberately not (8,128)-aligned so the padding path is
    # exercised, and large enough that the grid has multiple F and M tiles.
    in_features, out_features = 96, 80
    feat_dim = 520          # F -> F_pad = 768, TF = 256 (3 F-tiles)
    num_adj_rows = 300      # M -> multiple M-tiles of 128/256

    # Deterministic parameter init mirroring reset_parameters():
    # uniform(-stdv, stdv), stdv = sqrt(6 / (in + out)).
    stdv = math.sqrt(6.0 / (in_features + out_features))
    weight = jax.random.uniform(
        k_w, (in_features, out_features), jnp.float32, minval=-stdv, maxval=stdv)

    inp = jax.random.normal(k_x, (in_features, feat_dim), jnp.float32)
    adj = jax.random.uniform(k_a, (num_adj_rows, out_features), jnp.float32)

    fwd = jax.jit(graph_convolution_forward)
    out = jax.block_until_ready(fwd(inp, adj, weight))

    # Reference #1: exact same math as the kernel (bf16 operands, f32 accumulate).
    xb = inp.astype(jnp.bfloat16).astype(jnp.float32)
    wb = weight.astype(jnp.bfloat16).astype(jnp.float32)
    ab = adj.astype(jnp.bfloat16).astype(jnp.float32)
    support = jnp.matmul(wb.T, xb)                                   # (out, F)
    support_b = support.astype(jnp.bfloat16).astype(jnp.float32)
    ref_bf16 = jnp.maximum(jnp.matmul(ab, support_b), 0.0)           # (M, F)
    assert out.shape == ref_bf16.shape
    assert jnp.allclose(out, ref_bf16, atol=2e-2, rtol=2e-2), "kernel != bf16 reference"

    # Reference #2: pure-f32 PyTorch semantics (loose tolerance: bf16-fed MXU).
    support_f32 = jnp.matmul(inp.T, weight).T                        # (out, F)
    ref_f32 = jnp.maximum(jnp.matmul(adj, support_f32), 0.0)         # (M, F)
    assert jnp.allclose(out, ref_f32, atol=0.25, rtol=0.05), "drifted from f32 semantics"

    print("KERNEL_OK")
</pallas_src>

<mosaic_0001>
module attributes {stable_mosaic.version = 11 : i64} {
  func.func @gcn_kernel(%arg0: i32, %arg1: i32, %arg2: memref<128x256xbf16, #tpu.memory_space<vmem>>, %arg3: memref<256x128xbf16, #tpu.memory_space<vmem>>, %arg4: memref<512x256xbf16, #tpu.memory_space<vmem>>, %arg5: memref<256x256xf32, #tpu.memory_space<vmem>>, %arg6: memref<256x256xbf16, #tpu.memory_space<vmem>>) attributes {dimension_semantics = [#tpu.dimension_semantics<parallel>, #tpu.dimension_semantics<arbitrary>], iteration_bounds = array<i64: 3, 2>, scalar_prefetch = 0 : i64, scratch_operands = 1 : i64, tpu.core_type = #tpu.core_type<tc>, window_params = [{transform_indices = @transform_0, window_bounds = array<i64: 128, 256>}, {pipeline_mode = #tpu.pipeline_mode<synchronous>, transform_indices = @transform_1, window_bounds = array<i64: 256, 128>}, {pipeline_mode = #tpu.pipeline_mode<synchronous>, transform_indices = @transform_2, window_bounds = array<i64: 512, 256>}, {transform_indices = @transform_3, window_bounds = array<i64: 256, 256>}]} {
    %c0_i32 = arith.constant 0 : i32
    %0 = arith.cmpi eq, %arg1, %c0_i32 : i32
    %1 = arith.extui %0 : i1 to i32
    %c0_i32_0 = arith.constant 0 : i32
    %2 = arith.cmpi ne, %1, %c0_i32_0 : i32
    scf.if %2 {
      %c0_6 = arith.constant 0 : index
      %c0_7 = arith.constant 0 : index
      %12 = vector.load %arg3[%c0_6, %c0_7] : memref<256x128xbf16, #tpu.memory_space<vmem>>, vector<256x128xbf16>
      %c0_8 = arith.constant 0 : index
      %c0_9 = arith.constant 0 : index
      %13 = vector.load %arg2[%c0_8, %c0_9] : memref<128x256xbf16, #tpu.memory_space<vmem>>, vector<128x256xbf16>
      %cst_10 = arith.constant dense<0.000000e+00> : vector<256x256xf32>
      %14 = tpu.matmul %12, %13, %cst_10 {dimension_numbers = #tpu.dot_dimension_numbers<[1], [0], [0], [1], [0, 0, 1, 1], [], []>} : vector<256x128xbf16>, vector<128x256xbf16>, vector<256x256xf32> -> vector<256x256xf32>
      %15 = arith.truncf %14 : vector<256x256xf32> to vector<256x256xbf16>
      %c0_11 = arith.constant 0 : index
      %c0_12 = arith.constant 0 : index
      %16 = vector.load %arg6[%c0_11, %c0_12] : memref<256x256xbf16, #tpu.memory_space<vmem>>, vector<256x256xbf16>
      tpu.vector_store %arg6[%c0_11, %c0_12], %15 {strides = array<i32>} : memref<256x256xbf16, #tpu.memory_space<vmem>>, vector<256x256xbf16>,
    } else {
    }
    %c256_i32 = arith.constant 256 : i32
    %3 = arith.muli %arg1, %c256_i32 : i32
    %4 = tpu.assume_multiple %3, 256 : i32
    %5 = arith.index_cast %4 : i32 to index
    %c0 = arith.constant 0 : index
    %6 = vector.load %arg4[%5, %c0] : memref<512x256xbf16, #tpu.memory_space<vmem>>, vector<256x256xbf16>
    %c0_1 = arith.constant 0 : index
    %c0_2 = arith.constant 0 : index
    %7 = vector.load %arg6[%c0_1, %c0_2] : memref<256x256xbf16, #tpu.memory_space<vmem>>, vector<256x256xbf16>
    %cst = arith.constant dense<0.000000e+00> : vector<256x256xf32>
    %8 = tpu.matmul %6, %7, %cst {dimension_numbers = #tpu.dot_dimension_numbers<[1], [0], [0], [1], [0, 0, 1, 1], [], []>} : vector<256x256xbf16>, vector<256x256xbf16>, vector<256x256xf32> -> vector<256x256xf32>
    %cst_3 = arith.constant 0.000000e+00 : f32
    %9 = vector.broadcast %cst_3 : f32 to vector<256x256xf32>
    %10 = arith.maximumf %8, %9 : vector<256x256xf32>
    %c0_4 = arith.constant 0 : index
    %c0_5 = arith.constant 0 : index
    %11 = vector.load %arg5[%c0_4, %c0_5] : memref<256x256xf32, #tpu.memory_space<vmem>>, vector<256x256xf32>
    tpu.vector_store %arg5[%c0_4, %c0_5], %10 {strides = array<i32>} : memref<256x256xf32, #tpu.memory_space<vmem>>, vector<256x256xf32>,
    return
  }
  func.func @transform_0(%arg0: i32, %arg1: i32) -> (i32, i32) {
    %c0_i32 = arith.constant 0 : i32
    %c0_i32_0 = arith.constant 0 : i32
    return %c0_i32, %arg0 : i32, i32
  }
  func.func @transform_1(%arg0: i32, %arg1: i32) -> (i32, i32) {
    %c0_i32 = arith.constant 0 : i32
    %c0_i32_0 = arith.constant 0 : i32
    %c0_i32_1 = arith.constant 0 : i32
    return %c0_i32, %c0_i32_0 : i32, i32
  }
  func.func @transform_2(%arg0: i32, %arg1: i32) -> (i32, i32) {
    %c0_i32 = arith.constant 0 : i32
    %c0_i32_0 = arith.constant 0 : i32
    %c0_i32_1 = arith.constant 0 : i32
    return %c0_i32, %c0_i32_0 : i32, i32
  }
  func.func @transform_3(%arg0: i32, %arg1: i32) -> (i32, i32) {
    %c0_i32 = arith.constant 0 : i32
    return %arg1, %arg0 : i32, i32
  }
}

</mosaic_0001>

<bundles_post_ra>
// kernel: graph_convolution_forward.1
= control target key start
LH: loop header
LB: loop body
LE: loop exit
PB: predicated region body
PF: predicated region fallthrough
CT: control target
= control target key end

     0   :  { %s1933_s12 = smov 0   ;;  %s1935_s13 = smov 0   ;;  %s2392_s0 = inlined_call_operand.vmem [shape: bf16[128,768], index: 0, kind: input, shape index: {}]   ;;  %s2393_s1 = inlined_call_operand.vmem [shape: bf16[256,128], index: 1, kind: input, shape index: {}]   ;;  %s2394_s2 = inlined_call_operand.vmem [shape: bf16[512,256], index: 2, kind: input, shape index: {}]   ;;  %s2395_s3 = inlined_call_operand.vmem [shape: f32[512,768], index: 3, kind: output, shape index: {}]  }
   0x1   :  { %s1937_s14 = smov 0   ;;  %s1939_s15 = smov 0  }
   0x2   :  { %s1941_s16 = smov 0   ;;  %s1943_s17 = smov 0  }
   0x3   :  { %s1945_s18 = smov 0   ;;  %s1947_s19 = smov 0  }
   0x4   :  { %s1949_s20 = smov 0  }
   0x5 LB: > { %s22_s21 = sadd.s32 1, %s1902_s18  ;;  %s25_s22 = sadd.s32 1, %s1906_s19  ;;  %s1910_s20 = sphi %s1949_s20, %s13_s20   ;;  %s1906_s19 = sphi %s1947_s19, %s2405_s19   ;;  %s1902_s18 = sphi %s1945_s18, %s2404_s18   ;;  %s1898_s17 = sphi %s1943_s17, %s2403_s17   ;;  %s1894_s16 = sphi %s1941_s16, %s2402_s16   ;;  %s1890_s15 = sphi %s1939_s15, %s2401_s15   ;;  %s1886_s14 = sphi %s1937_s14, %s2400_s14   ;;  %s1882_s13 = sphi %s1935_s13, %s2399_s13   ;;  %s1878_s12 = sphi %s1933_s12, %s2398_s12  }
   0x6   : > { %p23_p0 = scmp.ge.s32.totalorder %s22_s21, 2  ;;  %p39_p1 = scmp.ne.s32.totalorder %s1890_s15, %s1886_s14 }
   0x7   : > { %s1543_s23 = sadd.s32 4294967295, %s1910_s20   ;;  %p40_p2 = scmp.eq.s32.totalorder %s1910_s20, 0 }
   0x8   : > { %s2407_s21 = smov (%p23_p0, %s22_s21), 0  ;;  %s2409_s22 = smov (!%p23_p0, %s25_s22), %s1906_s19 }
   0x9   : > { %p27_p3 = scmp.ge.s32.totalorder %s2409_s22, 3  ;;  %s97_s24 = ssub.s32 %s1902_s18, %s2407_s21 }
   0xa   : > { %p1989_p4 = por %p40_p2, %p39_p1  ;;  %p112_p5 = scmp.ne.s32.totalorder %s1882_s13, %s1878_s12 }
   0xb   : > { %s2411_s22 = smov (%p27_p3, %s2409_s22), 0  ;;  %s32_s26 = sadd.s32 1, %s1890_s15 }
   0xc   : > { %p113_p6 = scmp.eq.s32.totalorder %s1543_s23, 5  ;;  %s29_s27 = ssub.s32 %s1906_s19, %s2411_s22 }
   0xd   : > { %s102_s28 = sadd.s32 1, %s1882_s13  ;;  %p30_p7 = scmp.eq.s32.totalorder %s29_s27, 0 }
   0xe   : > { %s99_s29 = sor.u32 %s97_s24, %s29_s27  ;;  %p2001_p9 = por %p113_p6, %p112_p5 }
   0xf   : > { %p100_p8 = scmp.eq.s32.totalorder %s99_s29, 0  ;;  %p1546_p10 = scmp.ge.s32.totalorder %s1910_s20, 6 }
  0x10   : > { %s2006_s4 = scalar_select %p30_p7, %s1890_s15, %s32_s26  }
  0x11   : > { %s2009_s5 = scalar_select %p100_p8, %s1882_s13, %s102_s28  }
  0x12   : > { %141 = sbr.rel (%p1546_p10) target bundleno = 37 (0x25), region = 24 }
  0x19   : > { %144 = sbr.rel (!%p1989_p4) target bundleno = 37 (0x25), region = 28  ;;  %s146_s6 = sand.u32 (%p1989_p4), 1, %s1890_s15  }
  0x1a   : > { %s1628_s7 = sshll.u32 (%p1989_p4), %s1906_s19, 3  ;;  %s1547_s8 = sshll.u32 (%p1989_p4), %s146_s6, 7 }
  0x1b   : > { %s2019_s11 = scalar_lea.vmem (%p1989_p4), %s2392_s0, %s1628_s7  ;;  %s148_s23 = scalar_lea.vmem (%p1989_p4), [#allocation3], %s1547_s8 }
  0x1c   : > { %v209_v0 = vld [vmem:[%s2019_s11] sm:$0xff] (%p1989_p4)  ;;  %v211_v1 = vld [vmem:[%s2019_s11 + $0x18] sm:$0xff] (%p1989_p4)  ;;  %v213_v2 = vld [vmem:[%s2019_s11 + $0x30] sm:$0xff] (%p1989_p4) }
  0x1d   : > { %210 = vst [vmem:[%s148_s23] sm:$0xff] (%p1989_p4), %v209_v0  ;;  %212 = vst [vmem:[%s148_s23 + $0x8] sm:$0xff] (%p1989_p4), %v211_v1  ;;  %v215_v3 = vld [vmem:[%s2019_s11 + $0x48] sm:$0xff] (%p1989_p4)  ;;  %v217_v4 = vld [vmem:[%s2019_s11 + $0x60] sm:$0xff] (%p1989_p4) }
  0x1e   : > { %214 = vst [vmem:[%s148_s23 + $0x10] sm:$0xff] (%p1989_p4), %v213_v2  ;;  %v219_v5 = vld [vmem:[%s2019_s11 + $0x78] sm:$0xff] (%p1989_p4)  ;;  %216 = vst [vmem:[%s148_s23 + $0x18] sm:$0xff] (%p1989_p4), %v215_v3  ;;  %v221_v6 = vld [vmem:[%s2019_s11 + $0x90] sm:$0xff] (%p1989_p4) }
  0x1f   : > { %218 = vst [vmem:[%s148_s23 + $0x20] sm:$0xff] (%p1989_p4), %v217_v4  ;;  %220 = vst [vmem:[%s148_s23 + $0x28] sm:$0xff] (%p1989_p4), %v219_v5  ;;  %v223_v7 = vld [vmem:[%s2019_s11 + $0xa8] sm:$0xff] (%p1989_p4)  ;;  %v225_v8 = vld [vmem:[%s2019_s11 + $0xc0] sm:$0xff] (%p1989_p4) }
  0x20   : > { %222 = vst [vmem:[%s148_s23 + $0x30] sm:$0xff] %v221_v6  ;;  %224 = vst [vmem:[%s148_s23 + $0x38] sm:$0xff] %v223_v7  ;;  %v227_v9 = vld [vmem:[%s2019_s11 + $0xd8] sm:$0xff]  ;;  %v229_v10 = vld [vmem:[%s2019_s11 + $0xf0] sm:$0xff] }
  0x21   : > { %226 = vst [vmem:[%s148_s23 + $0x40] sm:$0xff] %v225_v8  ;;  %v231_v11 = vld [vmem:[%s2019_s11 + $0x108] sm:$0xff]  ;;  %228 = vst [vmem:[%s148_s23 + $0x48] sm:$0xff] %v227_v9  ;;  %v233_v12 = vld [vmem:[%s2019_s11 + $0x120] sm:$0xff] }
  0x22   : > { %230 = vst [vmem:[%s148_s23 + $0x50] sm:$0xff] %v229_v10  ;;  %232 = vst [vmem:[%s148_s23 + $0x58] sm:$0xff] %v231_v11  ;;  %v235_v13 = vld [vmem:[%s2019_s11 + $0x138] sm:$0xff]  ;;  %v237_v14 = vld [vmem:[%s2019_s11 + $0x150] sm:$0xff] }
  0x23   : > { %234 = vst [vmem:[%s148_s23 + $0x60] sm:$0xff] %v233_v12  ;;  %236 = vst [vmem:[%s148_s23 + $0x68] sm:$0xff] %v235_v13  ;;  %v239_v15 = vld [vmem:[%s2019_s11 + $0x168] sm:$0xff] }
  0x24   : > { %238 = vst [vmem:[%s148_s23 + $0x70] sm:$0xff] %v237_v14  ;;  %240 = vst [vmem:[%s148_s23 + $0x78] sm:$0xff] %v239_v15 }
  0x25 PF: > { %p1550_p11 = scmp.ge.s32.totalorder %s1910_s20, 1  ;;  %p245_p12 = scmp.lt.s32.totalorder %s1910_s20, 7 }
  0x27   : > { %p246_p13 = pnand %p1550_p11, %p245_p12 }
  0x28   : > { %s252_s24 = sand.u32 (!%p246_p13), 1, %s1886_s14   ;;  %s271_s25 = sand.u32 (!%p246_p13), 1, %s1878_s12  }
  0x29   : > { %249 = sbr.rel (%p246_p13) target bundleno = 715 (0x2cb), region = 66  ;;  %s1551_s26 = sshll.u32 (!%p246_p13), %s252_s24, 7 }
  0x2a   : > { %s1552_s27 = sshll.u32 (!%p246_p13), %s271_s25, 9  ;;  %s2041_s28 = scalar_lea.vmem (!%p246_p13), [#allocation3], %s1551_s26 }
  0x2b   : > { %s2043_s29 = scalar_lea.vmem (!%p246_p13), [#allocation4], %s1552_s27  ;;  %p1553_p0 = scmp.ne.s32.totalorder (!%p246_p13), %s1894_s16, 0 }
  0x30   : > { %281 = sbr.rel (%p1553_p0) target bundleno = 356 (0x164), region = 74  ;;  %v1752_v16 = vld [vmem:[%s2041_s28 + $0x4] ss:$8 sps:$4 sm:$0xff] (!%p1553_p0)   ;;  %v1754_v17 = vld [vmem:[%s2041_s28] ss:$8 sps:$4 sm:$0xff] (!%p1553_p0)   ;;  %v1912_v18 = vmov (!%p1553_p0), 0  }
  0x31   : > { %538 = vmatprep.mubr.bf16.mxu0 (!%p1553_p0), %v1912_v18  ;;  %618 = vmatprep.mubr.bf16.mxu1 (!%p1553_p0), %v1912_v18  ;;  %v1755_v19 = vld [vmem:[%s2041_s28 + $0x14] ss:$8 sps:$4 sm:$0xff] (!%p1553_p0)   ;;  %v1757_v20 = vld [vmem:[%s2041_s28 + $0x10] ss:$8 sps:$4 sm:$0xff] (!%p1553_p0)   ;;  %v1758_v21 = vld [vmem:[%s2041_s28 + $0x24] ss:$8 sps:$4 sm:$0xff] (!%p1553_p0)  }
  0x32   : > { %506 = vmatprep.subr.bf16.mxu0 (!%p1553_p0), %v1752_v16  ;;  %1630 = vmatprep.subr.bf16.mxu1 (!%p1553_p0), %v1752_v16  ;;  %v1760_v22 = vld [vmem:[%s2041_s28 + $0x20] ss:$8 sps:$4 sm:$0xff] (!%p1553_p0)   ;;  %v1761_v23 = vld [vmem:[%s2041_s28 + $0x34] ss:$8 sps:$4 sm:$0xff] (!%p1553_p0)   ;;  %v1763_v24 = vld [vmem:[%s2041_s28 + $0x30] ss:$8 sps:$4 sm:$0xff] (!%p1553_p0)  }
  0x33   : > { %507 = vmatpush1.bf16.msra.mxu0 (!%p1553_p0), %v1754_v17  ;;  %1638 = vmatpush1.bf16.msra.mxu1 (!%p1553_p0), %v1754_v17  ;;  %v1764_v25 = vld [vmem:[%s2041_s28 + $0x44] ss:$8 sps:$4 sm:$0xff] (!%p1553_p0)   ;;  %v1766_v26 = vld [vmem:[%s2041_s28 + $0x40] ss:$8 sps:$4 sm:$0xff] (!%p1553_p0)   ;;  %v1767_v27 = vld [vmem:[%s2041_s28 + $0x54] ss:$8 sps:$4 sm:$0xff] (!%p1553_p0)  }
  0x34   : > { %508 = vmatprep.subr.bf16.mxu0 (!%p1553_p0), %v1755_v19  ;;  %1631 = vmatprep.subr.bf16.mxu1 (!%p1553_p0), %v1755_v19  ;;  %v1769_v28 = vld [vmem:[%s2041_s28 + $0x50] ss:$8 sps:$4 sm:$0xff] (!%p1553_p0)   ;;  %v1770_v29 = vld [vmem:[%s2041_s28 + $0x64] ss:$8 sps:$4 sm:$0xff] (!%p1553_p0)   ;;  %v1772_v30 = vld [vmem:[%s2041_s28 + $0x60] ss:$8 sps:$4 sm:$0xff] (!%p1553_p0)  }
  0x35   : > { %v1773_v31 = vld [vmem:[%s2041_s28 + $0x74] ss:$8 sps:$4 sm:$0xff] (!%p1553_p0)   ;;  %v1775_v32 = vld [vmem:[%s2041_s28 + $0x70] ss:$8 sps:$4 sm:$0xff] (!%p1553_p0)   ;;  %v1776_v33 = vld [vmem:[%s2393_s1] sm:$0xff] (!%p1553_p0)  }
  0x36   : > { %v1777_v34 = vld [vmem:[%s2393_s1 + $0x40] sm:$0xff] (!%p1553_p0)   ;;  %v1778_v35 = vld [vmem:[%s2393_s1 + $0x8] sm:$0xff] (!%p1553_p0)   ;;  %v1780_v37 = vld [vmem:[%s2393_s1 + $0x10] sm:$0xff] (!%p1553_p0)  }
  0x37   : > { %509 = vmatpush1.bf16.msra.mxu0 %v1757_v20  ;;  %1639 = vmatpush1.bf16.msra.mxu1 %v1757_v20  ;;  %v1779_v36 = vld [vmem:[%s2393_s1 + $0x48] sm:$0xff]   ;;  %v1781_v38 = vld [vmem:[%s2393_s1 + $0x50] sm:$0xff]   ;;  %v1782_v39 = vld [vmem:[%s2393_s1 + $0x18] sm:$0xff]  }
  0x38   : > { %510 = vmatprep.subr.bf16.mxu0 %v1758_v21  ;;  %1632 = vmatprep.subr.bf16.mxu1 %v1758_v21  ;;  %v1783_v40 = vld [vmem:[%s2393_s1 + $0x58] sm:$0xff]   ;;  %v1784_v41 = vld [vmem:[%s2393_s1 + $0x20] sm:$0xff]   ;;  %v1786_v43 = vld [vmem:[%s2393_s1 + $0x28] sm:$0xff]  }
  0x39   : > { %v1785_v42 = vld [vmem:[%s2393_s1 + $0x60] sm:$0xff]   ;;  %v1787_v44 = vld [vmem:[%s2393_s1 + $0x68] sm:$0xff]   ;;  %v1788_v45 = vld [vmem:[%s2393_s1 + $0x30] sm:$0xff]  }
  0x3a   : > { %v1789_v46 = vld [vmem:[%s2393_s1 + $0x70] sm:$0xff]   ;;  %v1790_v47 = vld [vmem:[%s2393_s1 + $0x38] sm:$0xff]  }
  0x3b   : > { %511 = vmatpush1.bf16.msra.mxu0 %v1760_v22  ;;  %1640 = vmatpush1.bf16.msra.mxu1 %v1760_v22  ;;  %v1791_v48 = vld [vmem:[%s2393_s1 + $0x78] sm:$0xff]  }
  0x3c   : > { %512 = vmatprep.subr.bf16.mxu0 %v1761_v23  ;;  %1633 = vmatprep.subr.bf16.mxu1 %v1761_v23 }
  0x3f   : > { %513 = vmatpush1.bf16.msra.mxu0 %v1763_v24  ;;  %1641 = vmatpush1.bf16.msra.mxu1 %v1763_v24 }
  0x40   : > { %514 = vmatprep.subr.bf16.mxu0 %v1764_v25  ;;  %1634 = vmatprep.subr.bf16.mxu1 %v1764_v25 }
  0x43   : > { %515 = vmatpush1.bf16.msra.mxu0 %v1766_v26  ;;  %1642 = vmatpush1.bf16.msra.mxu1 %v1766_v26 }
  0x44   : > { %516 = vmatprep.subr.bf16.mxu0 %v1767_v27  ;;  %1635 = vmatprep.subr.bf16.mxu1 %v1767_v27 }
  0x47   : > { %517 = vmatpush1.bf16.msra.mxu0 %v1769_v28  ;;  %1643 = vmatpush1.bf16.msra.mxu1 %v1769_v28 }
  0x48   : > { %518 = vmatprep.subr.bf16.mxu0 %v1770_v29  ;;  %1636 = vmatprep.subr.bf16.mxu1 %v1770_v29 }
  0x4b   : > { %519 = vmatpush1.bf16.msra.mxu0 %v1772_v30  ;;  %1644 = vmatpush1.bf16.msra.mxu1 %v1772_v30 }
  0x4c   : > { %520 = vmatprep.subr.bf16.mxu0 %v1773_v31  ;;  %1637 = vmatprep.subr.bf16.mxu1 %v1773_v31 }
  0x4f   : > { %521 = vmatpush1.bf16.msra.mxu0 %v1775_v32  ;;  %1645 = vmatpush1.bf16.msra.mxu1 %v1775_v32 }
  0x52   : > { %539 = vmatmul.mubr.bf16.vlgmr.msra.gmra.mrb[0].mxu0 %v1776_v33  ;;  %619 = vmatmul.mubr.bf16.vlgmr.msra.gmra.mrb[0].mxu1 %v1777_v34 }
  0x53   : > { %548 = vmatprep.mubr.bf16.mxu0 %v1912_v18  ;;  %628 = vmatprep.mubr.bf16.mxu1 %v1912_v18 }
  0x5a   : > { %549 = vmatmul.mubr.bf16.gmra.mrb[4].mxu0 %v1778_v35  ;;  %629 = vmatmul.mubr.bf16.gmra.mrb[4].mxu1 %v1779_v36 }
  0x5b   : > { %558 = vmatprep.mubr.bf16.mxu0 %v1912_v18  ;;  %638 = vmatprep.mubr.bf16.mxu1 %v1912_v18 }
  0x62   : > { %559 = vmatmul.mubr.bf16.gmra.mrb[8].mxu0 %v1780_v37  ;;  %639 = vmatmul.mubr.bf16.gmra.mrb[8].mxu1 %v1781_v38 }
  0x63   : > { %568 = vmatprep.mubr.bf16.mxu0 %v1912_v18  ;;  %648 = vmatprep.mubr.bf16.mxu1 %v1912_v18 }
  0x6a   : > { %569 = vmatmul.mubr.bf16.gmra.mrb[12].mxu0 %v1782_v39  ;;  %649 = vmatmul.mubr.bf16.gmra.mrb[12].mxu1 %v1783_v40 }
  0x6b   : > { %578 = vmatprep.mubr.bf16.mxu0 %v1912_v18  ;;  %658 = vmatprep.mubr.bf16.mxu1 %v1912_v18 }
  0x72   : > { %579 = vmatmul.mubr.bf16.gmra.mrb[16].mxu0 %v1784_v41  ;;  %659 = vmatmul.mubr.bf16.gmra.mrb[16].mxu1 %v1785_v42 }
  0x73   : > { %588 = vmatprep.mubr.bf16.mxu0 %v1912_v18  ;;  %668 = vmatprep.mubr.bf16.mxu1 %v1912_v18 }
  0x7a   : > { %589 = vmatmul.mubr.bf16.gmra.mrb[20].mxu0 %v1786_v43  ;;  %669 = vmatmul.mubr.bf16.gmra.mrb[20].mxu1 %v1787_v44 }
  0x7b   : > { %598 = vmatprep.mubr.bf16.mxu0 %v1912_v18  ;;  %678 = vmatprep.mubr.bf16.mxu1 %v1912_v18 }
  0x82   : > { %599 = vmatmul.mubr.bf16.gmra.mrb[24].mxu0 %v1788_v45  ;;  %679 = vmatmul.mubr.bf16.gmra.mrb[24].mxu1 %v1789_v46 }
  0x83   : > { %608 = vmatprep.mubr.bf16.mxu0 %v1912_v18  ;;  %688 = vmatprep.mubr.bf16.mxu1 %v1912_v18 }
  0x8a   : > { %609 = vmatmul.mubr.bf16.gmra.mrb[28].mxu0 %v1790_v47  ;;  %689 = vmatmul.mubr.bf16.gmra.mrb[28].mxu1 %v1791_v48 }
 0x125   : > { %v540_v49 = vpop.f32.mrb[0].mxu0  ;;  %v620_v50 = vpop.f32.mrb[0].mxu1 }
 0x126   : > { %v542_v51 = vpop.f32.mrb[1].mxu0  ;;  %v622_v52 = vpop.f32.mrb[1].mxu1 }
 0x127   : > { %v544_v53 = vpop.f32.mrb[2].mxu0  ;;  %v624_v54 = vpop.f32.mrb[2].mxu1 }
 0x128   : > { %v699_v55 = vpack.c.bf16 %v544_v53, %v540_v49  ;;  %v715_v56 = vpack.c.bf16 %v624_v54, %v620_v50  ;;  %v546_v57 = vpop.f32.mrb[3].mxu0  ;;  %v626_v58 = vpop.f32.mrb[3].mxu1 }
 0x129   : > { %v700_v59 = vpack.c.bf16 %v546_v57, %v542_v51  ;;  %v716_v60 = vpack.c.bf16 %v626_v58, %v622_v52 }
 0x12a   : > { %731 = vst [vmem:[#allocation2] sm:$0xff] %v699_v55  ;;  %747 = vst [vmem:[#allocation2 + $0x80] sm:$0xff] %v715_v56 }
 0x12b   : > { %732 = vst [vmem:[#allocation2 + $0x8] sm:$0xff] %v700_v59  ;;  %748 = vst [vmem:[#allocation2 + $0x88] sm:$0xff] %v716_v60 }
 0x12d   : > { %v550_v61 = vpop.f32.mrb[4].mxu0  ;;  %v630_v62 = vpop.f32.mrb[4].mxu1 }
 0x12e   : > { %v552_v63 = vpop.f32.mrb[5].mxu0  ;;  %v632_v0 = vpop.f32.mrb[5].mxu1 }
 0x12f   : > { %v554_v1 = vpop.f32.mrb[6].mxu0  ;;  %v634_v2 = vpop.f32.mrb[6].mxu1 }
 0x130   : > { %v701_v3 = vpack.c.bf16 %v554_v1, %v550_v61  ;;  %v717_v4 = vpack.c.bf16 %v634_v2, %v630_v62  ;;  %v556_v5 = vpop.f32.mrb[7].mxu0  ;;  %v636_v6 = vpop.f32.mrb[7].mxu1 }
 0x131   : > { %v702_v7 = vpack.c.bf16 %v556_v5, %v552_v63  ;;  %v718_v8 = vpack.c.bf16 %v636_v6, %v632_v0 }
 0x132   : > { %733 = vst [vmem:[#allocation2 + $0x10] sm:$0xff] %v701_v3  ;;  %749 = vst [vmem:[#allocation2 + $0x90] sm:$0xff] %v717_v4 }
 0x133   : > { %734 = vst [vmem:[#allocation2 + $0x18] sm:$0xff] %v702_v7  ;;  %750 = vst [vmem:[#allocation2 + $0x98] sm:$0xff] %v718_v8 }
 0x135   : > { %v560_v9 = vpop.f32.mrb[8].mxu0  ;;  %v640_v10 = vpop.f32.mrb[8].mxu1 }
 0x136   : > { %v562_v11 = vpop.f32.mrb[9].mxu0  ;;  %v642_v12 = vpop.f32.mrb[9].mxu1 }
 0x137   : > { %v564_v13 = vpop.f32.mrb[10].mxu0  ;;  %v644_v14 = vpop.f32.mrb[10].mxu1 }
 0x138   : > { %v703_v15 = vpack.c.bf16 %v564_v13, %v560_v9  ;;  %v719_v16 = vpack.c.bf16 %v644_v14, %v640_v10  ;;  %v566_v17 = vpop.f32.mrb[11].mxu0  ;;  %v646_v18 = vpop.f32.mrb[11].mxu1 }
 0x139   : > { %v704_v19 = vpack.c.bf16 %v566_v17, %v562_v11  ;;  %v720_v20 = vpack.c.bf16 %v646_v18, %v642_v12 }
 0x13a   : > { %735 = vst [vmem:[#allocation2 + $0x20] sm:$0xff] %v703_v15  ;;  %751 = vst [vmem:[#allocation2 + $0xa0] sm:$0xff] %v719_v16 }
 0x13b   : > { %736 = vst [vmem:[#allocation2 + $0x28] sm:$0xff] %v704_v19  ;;  %752 = vst [vmem:[#allocation2 + $0xa8] sm:$0xff] %v720_v20 }
 0x13d   : > { %v570_v21 = vpop.f32.mrb[12].mxu0  ;;  %v650_v22 = vpop.f32.mrb[12].mxu1 }
 0x13e   : > { %v572_v23 = vpop.f32.mrb[13].mxu0  ;;  %v652_v24 = vpop.f32.mrb[13].mxu1 }
 0x13f   : > { %v574_v25 = vpop.f32.mrb[14].mxu0  ;;  %v654_v26 = vpop.f32.mrb[14].mxu1 }
 0x140   : > { %v705_v27 = vpack.c.bf16 %v574_v25, %v570_v21  ;;  %v721_v28 = vpack.c.bf16 %v654_v26, %v650_v22  ;;  %v576_v29 = vpop.f32.mrb[15].mxu0  ;;  %v656_v30 = vpop.f32.mrb[15].mxu1 }
 0x141   : > { %v706_v31 = vpack.c.bf16 %v576_v29, %v572_v23  ;;  %v722_v32 = vpack.c.bf16 %v656_v30, %v652_v24 }
 0x142   : > { %737 = vst [vmem:[#allocation2 + $0x30] sm:$0xff] %v705_v27  ;;  %753 = vst [vmem:[#allocation2 + $0xb0] sm:$0xff] %v721_v28 }
 0x143   : > { %738 = vst [vmem:[#allocation2 + $0x38] sm:$0xff] %v706_v31  ;;  %754 = vst [vmem:[#allocation2 + $0xb8] sm:$0xff] %v722_v32 }
 0x145   : > { %v580_v33 = vpop.f32.mrb[16].mxu0  ;;  %v660_v34 = vpop.f32.mrb[16].mxu1 }
 0x146   : > { %v582_v35 = vpop.f32.mrb[17].mxu0  ;;  %v662_v36 = vpop.f32.mrb[17].mxu1 }
 0x147   : > { %v584_v37 = vpop.f32.mrb[18].mxu0  ;;  %v664_v38 = vpop.f32.mrb[18].mxu1 }
 0x148   : > { %v707_v39 = vpack.c.bf16 %v584_v37, %v580_v33  ;;  %v723_v40 = vpack.c.bf16 %v664_v38, %v660_v34  ;;  %v586_v41 = vpop.f32.mrb[19].mxu0  ;;  %v666_v42 = vpop.f32.mrb[19].mxu1 }
 0x149   : > { %v708_v43 = vpack.c.bf16 %v586_v41, %v582_v35  ;;  %v724_v44 = vpack.c.bf16 %v666_v42, %v662_v36 }
 0x14a   : > { %739 = vst [vmem:[#allocation2 + $0x40] sm:$0xff] %v707_v39  ;;  %755 = vst [vmem:[#allocation2 + $0xc0] sm:$0xff] %v723_v40 }
 0x14b   : > { %740 = vst [vmem:[#allocation2 + $0x48] sm:$0xff] %v708_v43  ;;  %756 = vst [vmem:[#allocation2 + $0xc8] sm:$0xff] %v724_v44 }
 0x14d   : > { %v590_v45 = vpop.f32.mrb[20].mxu0  ;;  %v670_v46 = vpop.f32.mrb[20].mxu1 }
 0x14e   : > { %v592_v47 = vpop.f32.mrb[21].mxu0  ;;  %v672_v48 = vpop.f32.mrb[21].mxu1 }
 0x14f   : > { %v594_v49 = vpop.f32.mrb[22].mxu0  ;;  %v674_v50 = vpop.f32.mrb[22].mxu1 }
 0x150   : > { %v709_v51 = vpack.c.bf16 %v594_v49, %v590_v45  ;;  %v725_v52 = vpack.c.bf16 %v674_v50, %v670_v46  ;;  %v596_v53 = vpop.f32.mrb[23].mxu0  ;;  %v676_v54 = vpop.f32.mrb[23].mxu1 }
 0x151   : > { %v710_v55 = vpack.c.bf16 %v596_v53, %v592_v47  ;;  %v726_v56 = vpack.c.bf16 %v676_v54, %v672_v48 }
 0x152   : > { %741 = vst [vmem:[#allocation2 + $0x50] sm:$0xff] %v709_v51  ;;  %757 = vst [vmem:[#allocation2 + $0xd0] sm:$0xff] %v725_v52 }
 0x153   : > { %742 = vst [vmem:[#allocation2 + $0x58] sm:$0xff] %v710_v55  ;;  %758 = vst [vmem:[#allocation2 + $0xd8] sm:$0xff] %v726_v56 }
 0x155   : > { %v600_v57 = vpop.f32.mrb[24].mxu0  ;;  %v680_v58 = vpop.f32.mrb[24].mxu1 }
 0x156   : > { %v602_v59 = vpop.f32.mrb[25].mxu0  ;;  %v682_v60 = vpop.f32.mrb[25].mxu1 }
 0x157   : > { %v604_v61 = vpop.f32.mrb[26].mxu0  ;;  %v684_v62 = vpop.f32.mrb[26].mxu1 }
 0x158   : > { %v711_v63 = vpack.c.bf16 %v604_v61, %v600_v57  ;;  %v727_v0 = vpack.c.bf16 %v684_v62, %v680_v58  ;;  %v606_v1 = vpop.f32.mrb[27].mxu0  ;;  %v686_v2 = vpop.f32.mrb[27].mxu1 }
 0x159   : > { %v712_v3 = vpack.c.bf16 %v606_v1, %v602_v59  ;;  %v728_v4 = vpack.c.bf16 %v686_v2, %v682_v60 }
 0x15a   : > { %743 = vst [vmem:[#allocation2 + $0x60] sm:$0xff] %v711_v63  ;;  %759 = vst [vmem:[#allocation2 + $0xe0] sm:$0xff] %v727_v0 }
 0x15b   : > { %744 = vst [vmem:[#allocation2 + $0x68] sm:$0xff] %v712_v3  ;;  %760 = vst [vmem:[#allocation2 + $0xe8] sm:$0xff] %v728_v4 }
 0x15d   : > { %v610_v5 = vpop.f32.mrb[28].mxu0  ;;  %v690_v6 = vpop.f32.mrb[28].mxu1 }
 0x15e   : > { %v612_v7 = vpop.f32.mrb[29].mxu0  ;;  %v692_v8 = vpop.f32.mrb[29].mxu1 }
 0x15f   : > { %v614_v9 = vpop.f32.mrb[30].mxu0  ;;  %v694_v10 = vpop.f32.mrb[30].mxu1 }
 0x160   : > { %v713_v11 = vpack.c.bf16 %v614_v9, %v610_v5  ;;  %v729_v12 = vpack.c.bf16 %v694_v10, %v690_v6  ;;  %v616_v13 = vpop.f32.mrb[31].mxu0  ;;  %v696_v14 = vpop.f32.mrb[31].mxu1 }
 0x161   : > { %v714_v15 = vpack.c.bf16 %v616_v13, %v612_v7  ;;  %v730_v16 = vpack.c.bf16 %v696_v14, %v692_v8 }
 0x162   : > { %745 = vst [vmem:[#allocation2 + $0x70] sm:$0xff] %v713_v11  ;;  %761 = vst [vmem:[#allocation2 + $0xf0] sm:$0xff] %v729_v12 }
 0x163   : > { %746 = vst [vmem:[#allocation2 + $0x78] sm:$0xff] %v714_v15  ;;  %762 = vst [vmem:[#allocation2 + $0xf8] sm:$0xff] %v730_v16 }
 0x164 PF: > { %v802_v17 = vld [vmem:[#allocation2 + $0x8] sm:$0xff]  ;;  %v801_v18 = vld [vmem:[#allocation2] sm:$0xff]  ;;  %v804_v19 = vld [vmem:[#allocation2 + $0x18] sm:$0xff]  ;;  %s1586_s8 = sshll.u32 %s1894_s16, 8  ;;  %s1623_s23 = sshll.u32 (%p2001_p9), %s1898_s17, 1 }
 0x165   : > { %993 = vmatprep.subr.bf16.mxu0 %v802_v17  ;;  %1646 = vmatprep.subr.bf16.mxu1 %v802_v17  ;;  %v803_v20 = vld [vmem:[#allocation2 + $0x10] sm:$0xff]  ;;  %v806_v21 = vld [vmem:[#allocation2 + $0x28] sm:$0xff]  ;;  %v805_v22 = vld [vmem:[#allocation2 + $0x20] sm:$0xff]  ;;  %s2130_s11 = scalar_lea.vmem %s2394_s2, %s1586_s8  ;;  %s1678_s24 = smul.u32 (%p2001_p9), 192, %s1894_s16 }
 0x166   : > { %994 = vmatpush1.bf16.msra.mxu0 %v801_v18  ;;  %1662 = vmatpush1.bf16.msra.mxu1 %v801_v18  ;;  %v808_v23 = vld [vmem:[#allocation2 + $0x38] sm:$0xff]  ;;  %v807_v24 = vld [vmem:[#allocation2 + $0x30] sm:$0xff]  ;;  %v1794_v25 = vld [vmem:[%s2130_s11 + $0x4] ss:$8 sps:$4 sm:$0xff]  }
 0x167   : > { %995 = vmatprep.subr.bf16.mxu0 %v804_v19  ;;  %1647 = vmatprep.subr.bf16.mxu1 %v804_v19  ;;  %v810_v26 = vld [vmem:[#allocation2 + $0x48] sm:$0xff]  ;;  %v809_v28 = vld [vmem:[#allocation2 + $0x40] sm:$0xff]  ;;  %v812_v29 = vld [vmem:[#allocation2 + $0x58] sm:$0xff]  ;;  %s1324_s30 = sadd.s32 (%p2001_p9), %s1678_s24, %s1623_s23 }
 0x168   : > { %1025 = vmatprep.mubr.bf16.mxu0 %v1794_v25  ;;  %v1797_v27 = vld [vmem:[%s2130_s11 + $0x84] ss:$8 sps:$4 sm:$0xff]   ;;  %v811_v30 = vld [vmem:[#allocation2 + $0x50] sm:$0xff]  ;;  %v820_v37 = vld [vmem:[#allocation2 + $0x98] sm:$0xff]  ;;  %s1625_s25 = sshll.u32 (%p2001_p9), %s1324_s30, 3 }
 0x169   : > { %1105 = vmatprep.mubr.bf16.mxu1 %v1797_v27  ;;  %v814_v31 = vld [vmem:[#allocation2 + $0x68] sm:$0xff]  ;;  %v813_v32 = vld [vmem:[#allocation2 + $0x60] sm:$0xff]  ;;  %v815_v34 = vld [vmem:[#allocation2 + $0x70] sm:$0xff]  ;;  %s2247_s16 = scalar_lea.vmem (%p2001_p9), %s2395_s3, %s1625_s25 }
 0x16a   : > { %996 = vmatpush1.bf16.msra.mxu0 %v803_v20  ;;  %1663 = vmatpush1.bf16.msra.mxu1 %v803_v20  ;;  %v816_v33 = vld [vmem:[#allocation2 + $0x78] sm:$0xff]  ;;  %v818_v35 = vld [vmem:[#allocation2 + $0x88] sm:$0xff]  ;;  %v817_v36 = vld [vmem:[#allocation2 + $0x80] sm:$0xff] }
 0x16b   : > { %997 = vmatprep.subr.bf16.mxu0 %v806_v21  ;;  %1648 = vmatprep.subr.bf16.mxu1 %v806_v21  ;;  %v819_v38 = vld [vmem:[#allocation2 + $0x90] sm:$0xff]  ;;  %v822_v39 = vld [vmem:[#allocation2 + $0xa8] sm:$0xff]  ;;  %v821_v40 = vld [vmem:[#allocation2 + $0xa0] sm:$0xff] }
 0x16c   : > { %v824_v41 = vld [vmem:[#allocation2 + $0xb8] sm:$0xff]  ;;  %v823_v42 = vld [vmem:[#allocation2 + $0xb0] sm:$0xff]  ;;  %v826_v43 = vld [vmem:[#allocation2 + $0xc8] sm:$0xff] }
 0x16d   : > { %v825_v44 = vld [vmem:[#allocation2 + $0xc0] sm:$0xff]  ;;  %v828_v45 = vld [vmem:[#allocation2 + $0xd8] sm:$0xff]  ;;  %v827_v46 = vld [vmem:[#allocation2 + $0xd0] sm:$0xff] }
 0x16e   : > { %998 = vmatpush1.bf16.msra.mxu0 %v805_v22  ;;  %1664 = vmatpush1.bf16.msra.mxu1 %v805_v22  ;;  %v830_v47 = vld [vmem:[#allocation2 + $0xe8] sm:$0xff]  ;;  %v829_v48 = vld [vmem:[#allocation2 + $0xe0] sm:$0xff]  ;;  %v832_v49 = vld [vmem:[#allocation2 + $0xf8] sm:$0xff] }
 0x16f   : > { %999 = vmatprep.subr.bf16.mxu0 %v808_v23  ;;  %1649 = vmatprep.subr.bf16.mxu1 %v808_v23  ;;  %v831_v50 = vld [vmem:[#allocation2 + $0xf0] sm:$0xff]  ;;  %v1792_v51 = vld [vmem:[%s2130_s11] ss:$8 sps:$4 sm:$0xff]   ;;  %v1804_v57 = vld [vmem:[%s2130_s11 + $0x24] ss:$8 sps:$4 sm:$0xff]  }
 0x170   : > { %v1795_v52 = vld [vmem:[%s2130_s11 + $0x80] ss:$8 sps:$4 sm:$0xff]   ;;  %v1798_v53 = vld [vmem:[%s2130_s11 + $0x14] ss:$8 sps:$4 sm:$0xff]   ;;  %v1802_v55 = vld [vmem:[%s2130_s11 + $0x10] ss:$8 sps:$4 sm:$0xff]  }
 0x171   : > { %v1800_v54 = vld [vmem:[%s2130_s11 + $0x94] ss:$8 sps:$4 sm:$0xff]   ;;  %v1803_v56 = vld [vmem:[%s2130_s11 + $0x90] ss:$8 sps:$4 sm:$0xff]   ;;  %v1806_v58 = vld [vmem:[%s2130_s11 + $0xa4] ss:$8 sps:$4 sm:$0xff]  }
 0x172   : > { %1000 = vmatpush1.bf16.msra.mxu0 %v807_v24  ;;  %1665 = vmatpush1.bf16.msra.mxu1 %v807_v24  ;;  %v1808_v59 = vld [vmem:[%s2130_s11 + $0x20] ss:$8 sps:$4 sm:$0xff]   ;;  %v1810_v61 = vld [vmem:[%s2130_s11 + $0x34] ss:$8 sps:$4 sm:$0xff]   ;;  %v1814_v63 = vld [vmem:[%s2130_s11 + $0x30] ss:$8 sps:$4 sm:$0xff]  }
 0x173   : > { %1001 = vmatprep.subr.bf16.mxu0 %v810_v26  ;;  %1650 = vmatprep.subr.bf16.mxu1 %v810_v26  ;;  %v1809_v60 = vld [vmem:[%s2130_s11 + $0xa0] ss:$8 sps:$4 sm:$0xff]   ;;  %v1812_v62 = vld [vmem:[%s2130_s11 + $0xb4] ss:$8 sps:$4 sm:$0xff]   ;;  %v1815_v0 = vld [vmem:[%s2130_s11 + $0xb0] ss:$8 sps:$4 sm:$0xff]  }
 0x174   : > { %v1816_v1 = vld [vmem:[%s2130_s11 + $0x44] ss:$8 sps:$4 sm:$0xff]   ;;  %v1820_v3 = vld [vmem:[%s2130_s11 + $0x40] ss:$8 sps:$4 sm:$0xff]   ;;  %v1822_v5 = vld [vmem:[%s2130_s11 + $0x54] ss:$8 sps:$4 sm:$0xff]  }
 0x175   : > { %v1818_v2 = vld [vmem:[%s2130_s11 + $0xc4] ss:$8 sps:$4 sm:$0xff]   ;;  %v1821_v4 = vld [vmem:[%s2130_s11 + $0xc0] ss:$8 sps:$4 sm:$0xff]   ;;  %v1824_v6 = vld [vmem:[%s2130_s11 + $0xd4] ss:$8 sps:$4 sm:$0xff]  }
 0x176   : > { %1002 = vmatpush1.bf16.msra.mxu0 %v809_v28  ;;  %1666 = vmatpush1.bf16.msra.mxu1 %v809_v28  ;;  %v1826_v7 = vld [vmem:[%s2130_s11 + $0x50] ss:$8 sps:$4 sm:$0xff]   ;;  %v1828_v9 = vld [vmem:[%s2130_s11 + $0x64] ss:$8 sps:$4 sm:$0xff]   ;;  %v1832_v11 = vld [vmem:[%s2130_s11 + $0x60] ss:$8 sps:$4 sm:$0xff]  }
 0x177   : > { %1003 = vmatprep.subr.bf16.mxu0 %v812_v29  ;;  %1651 = vmatprep.subr.bf16.mxu1 %v812_v29  ;;  %v1827_v8 = vld [vmem:[%s2130_s11 + $0xd0] ss:$8 sps:$4 sm:$0xff]   ;;  %v1830_v10 = vld [vmem:[%s2130_s11 + $0xe4] ss:$8 sps:$4 sm:$0xff]   ;;  %v1833_v12 = vld [vmem:[%s2130_s11 + $0xe0] ss:$8 sps:$4 sm:$0xff]  }
 0x178   : > { %v1834_v13 = vld [vmem:[%s2130_s11 + $0x74] ss:$8 sps:$4 sm:$0xff]   ;;  %v1838_v15 = vld [vmem:[%s2130_s11 + $0x70] ss:$8 sps:$4 sm:$0xff]  }
 0x179   : > { %v1836_v14 = vld [vmem:[%s2130_s11 + $0xf4] ss:$8 sps:$4 sm:$0xff]   ;;  %v1839_v16 = vld [vmem:[%s2130_s11 + $0xf0] ss:$8 sps:$4 sm:$0xff]  }
 0x17a   : > { %1004 = vmatpush1.bf16.msra.mxu0 %v811_v30  ;;  %1667 = vmatpush1.bf16.msra.mxu1 %v811_v30 }
 0x17b   : > { %1005 = vmatprep.subr.bf16.mxu0 %v814_v31  ;;  %1652 = vmatprep.subr.bf16.mxu1 %v814_v31 }
 0x17e   : > { %1006 = vmatpush1.bf16.msra.mxu0 %v813_v32  ;;  %1668 = vmatpush1.bf16.msra.mxu1 %v813_v32 }
 0x17f   : > { %1007 = vmatprep.subr.bf16.mxu0 %v816_v33  ;;  %1653 = vmatprep.subr.bf16.mxu1 %v816_v33 }
 0x182   : > { %1008 = vmatpush1.bf16.msra.mxu0 %v815_v34  ;;  %1669 = vmatpush1.bf16.msra.mxu1 %v815_v34 }
 0x183   : > { %1009 = vmatprep.subr.bf16.mxu0 %v818_v35  ;;  %1654 = vmatprep.subr.bf16.mxu1 %v818_v35 }
 0x186   : > { %1010 = vmatpush1.bf16.msra.mxu0 %v817_v36  ;;  %1670 = vmatpush1.bf16.msra.mxu1 %v817_v36 }
 0x187   : > { %1011 = vmatprep.subr.bf16.mxu0 %v820_v37  ;;  %1655 = vmatprep.subr.bf16.mxu1 %v820_v37 }
 0x18a   : > { %1012 = vmatpush1.bf16.msra.mxu0 %v819_v38  ;;  %1671 = vmatpush1.bf16.msra.mxu1 %v819_v38 }
 0x18b   : > { %1013 = vmatprep.subr.bf16.mxu0 %v822_v39  ;;  %1656 = vmatprep.subr.bf16.mxu1 %v822_v39 }
 0x18e   : > { %1014 = vmatpush1.bf16.msra.mxu0 %v821_v40  ;;  %1672 = vmatpush1.bf16.msra.mxu1 %v821_v40 }
 0x18f   : > { %1015 = vmatprep.subr.bf16.mxu0 %v824_v41  ;;  %1657 = vmatprep.subr.bf16.mxu1 %v824_v41 }
 0x192   : > { %1016 = vmatpush1.bf16.msra.mxu0 %v823_v42  ;;  %1673 = vmatpush1.bf16.msra.mxu1 %v823_v42 }
 0x193   : > { %1017 = vmatprep.subr.bf16.mxu0 %v826_v43  ;;  %1658 = vmatprep.subr.bf16.mxu1 %v826_v43 }
 0x196   : > { %1018 = vmatpush1.bf16.msra.mxu0 %v825_v44  ;;  %1674 = vmatpush1.bf16.msra.mxu1 %v825_v44 }
 0x197   : > { %1019 = vmatprep.subr.bf16.mxu0 %v828_v45  ;;  %1659 = vmatprep.subr.bf16.mxu1 %v828_v45 }
 0x19a   : > { %1020 = vmatpush1.bf16.msra.mxu0 %v827_v46  ;;  %1675 = vmatpush1.bf16.msra.mxu1 %v827_v46 }
 0x19b   : > { %1021 = vmatprep.subr.bf16.mxu0 %v830_v47  ;;  %1660 = vmatprep.subr.bf16.mxu1 %v830_v47 }
 0x19e   : > { %1022 = vmatpush1.bf16.msra.mxu0 %v829_v48  ;;  %1676 = vmatpush1.bf16.msra.mxu1 %v829_v48 }
 0x19f   : > { %1023 = vmatprep.subr.bf16.mxu0 %v832_v49  ;;  %1661 = vmatprep.subr.bf16.mxu1 %v832_v49 }
 0x1a2   : > { %1024 = vmatpush1.bf16.msra.mxu0 %v831_v50  ;;  %1677 = vmatpush1.bf16.msra.mxu1 %v831_v50 }
 0x1a5   : > { %1026 = vmatmul.mubr.bf16.vlgmr.msra.gmra.mrb[0].mxu0 %v1792_v51  ;;  %1106 = vmatmul.mubr.bf16.vlgmr.msra.gmra.mrb[0].mxu1 %v1795_v52 }
 0x1a6   : > { %1035 = vmatprep.mubr.bf16.mxu0 %v1798_v53  ;;  %1115 = vmatprep.mubr.bf16.mxu1 %v1800_v54 }
 0x1ad   : > { %1036 = vmatmul.mubr.bf16.gmra.mrb[4].mxu0 %v1802_v55  ;;  %1116 = vmatmul.mubr.bf16.gmra.mrb[4].mxu1 %v1803_v56 }
 0x1ae   : > { %1045 = vmatprep.mubr.bf16.mxu0 %v1804_v57  ;;  %1125 = vmatprep.mubr.bf16.mxu1 %v1806_v58 }
 0x1b5   : > { %1046 = vmatmul.mubr.bf16.gmra.mrb[8].mxu0 %v1808_v59  ;;  %1126 = vmatmul.mubr.bf16.gmra.mrb[8].mxu1 %v1809_v60 }
 0x1b6   : > { %1055 = vmatprep.mubr.bf16.mxu0 %v1810_v61  ;;  %1135 = vmatprep.mubr.bf16.mxu1 %v1812_v62 }
 0x1bd   : > { %1056 = vmatmul.mubr.bf16.gmra.mrb[12].mxu0 %v1814_v63  ;;  %1136 = vmatmul.mubr.bf16.gmra.mrb[12].mxu1 %v1815_v0 }
 0x1be   : > { %1065 = vmatprep.mubr.bf16.mxu0 %v1816_v1  ;;  %1145 = vmatprep.mubr.bf16.mxu1 %v1818_v2 }
 0x1c5   : > { %1066 = vmatmul.mubr.bf16.gmra.mrb[16].mxu0 %v1820_v3  ;;  %1146 = vmatmul.mubr.bf16.gmra.mrb[16].mxu1 %v1821_v4 }
 0x1c6   : > { %1075 = vmatprep.mubr.bf16.mxu0 %v1822_v5  ;;  %1155 = vmatprep.mubr.bf16.mxu1 %v1824_v6 }
 0x1cd   : > { %1076 = vmatmul.mubr.bf16.gmra.mrb[20].mxu0 %v1826_v7  ;;  %1156 = vmatmul.mubr.bf16.gmra.mrb[20].mxu1 %v1827_v8 }
 0x1ce   : > { %1085 = vmatprep.mubr.bf16.mxu0 %v1828_v9  ;;  %1165 = vmatprep.mubr.bf16.mxu1 %v1830_v10 }
 0x1d5   : > { %1086 = vmatmul.mubr.bf16.gmra.mrb[24].mxu0 %v1832_v11  ;;  %1166 = vmatmul.mubr.bf16.gmra.mrb[24].mxu1 %v1833_v12 }
 0x1d6   : > { %1095 = vmatprep.mubr.bf16.mxu0 %v1834_v13  ;;  %1175 = vmatprep.mubr.bf16.mxu1 %v1836_v14 }
 0x1dd   : > { %1096 = vmatmul.mubr.bf16.gmra.mrb[28].mxu0 %v1838_v15  ;;  %1176 = vmatmul.mubr.bf16.gmra.mrb[28].mxu1 %v1839_v16 }
 0x278   : > { %v1027_v17 = vpop.f32.mrb[0].mxu0  ;;  %v1107_v18 = vpop.f32.mrb[0].mxu1 }
 0x279   : > { %v1186_v19 = vmax.f32 %v1027_v17, 0.0  ;;  %v1218_v20 = vmax.f32 %v1107_v18, 0.0  ;;  %v1029_v21 = vpop.f32.mrb[1].mxu0  ;;  %v1109_v22 = vpop.f32.mrb[1].mxu1 }
 0x27a   : > { %v1187_v23 = vmax.f32 %v1029_v21, 0.0  ;;  %v1219_v24 = vmax.f32 %v1109_v22, 0.0  ;;  %v1031_v25 = vpop.f32.mrb[2].mxu0  ;;  %v1111_v26 = vpop.f32.mrb[2].mxu1 }
 0x27b   : > { %1250 = vst [vmem:[%s2043_s29] sm:$0xff] %v1186_v19  ;;  %1282 = vst [vmem:[%s2043_s29 + $0x100] sm:$0xff] %v1218_v20  ;;  %v1188_v27 = vmax.f32 %v1031_v25, 0.0  ;;  %v1220_v28 = vmax.f32 %v1111_v26, 0.0  ;;  %v1033_v29 = vpop.f32.mrb[3].mxu0  ;;  %v1113_v30 = vpop.f32.mrb[3].mxu1 }
 0x27c   : > { %1251 = vst [vmem:[%s2043_s29 + $0x8] sm:$0xff] %v1187_v23  ;;  %1283 = vst [vmem:[%s2043_s29 + $0x108] sm:$0xff] %v1219_v24  ;;  %v1189_v31 = vmax.f32 %v1033_v29, 0.0  ;;  %v1221_v32 = vmax.f32 %v1113_v30, 0.0 }
 0x27d   : > { %1252 = vst [vmem:[%s2043_s29 + $0x10] sm:$0xff] %v1188_v27  ;;  %1284 = vst [vmem:[%s2043_s29 + $0x110] sm:$0xff] %v1220_v28 }
 0x27e   : > { %1253 = vst [vmem:[%s2043_s29 + $0x18] sm:$0xff] %v1189_v31  ;;  %1285 = vst [vmem:[%s2043_s29 + $0x118] sm:$0xff] %v1221_v32 }
 0x280   : > { %v1037_v33 = vpop.f32.mrb[4].mxu0  ;;  %v1117_v34 = vpop.f32.mrb[4].mxu1 }
 0x281   : > { %v1190_v35 = vmax.f32 %v1037_v33, 0.0  ;;  %v1222_v36 = vmax.f32 %v1117_v34, 0.0  ;;  %v1039_v37 = vpop.f32.mrb[5].mxu0  ;;  %v1119_v38 = vpop.f32.mrb[5].mxu1 }
 0x282   : > { %v1191_v39 = vmax.f32 %v1039_v37, 0.0  ;;  %v1223_v40 = vmax.f32 %v1119_v38, 0.0  ;;  %v1041_v41 = vpop.f32.mrb[6].mxu0  ;;  %v1121_v42 = vpop.f32.mrb[6].mxu1 }
 0x283   : > { %1254 = vst [vmem:[%s2043_s29 + $0x20] sm:$0xff] %v1190_v35  ;;  %1286 = vst [vmem:[%s2043_s29 + $0x120] sm:$0xff] %v1222_v36  ;;  %v1192_v43 = vmax.f32 %v1041_v41, 0.0  ;;  %v1224_v44 = vmax.f32 %v1121_v42, 0.0  ;;  %v1043_v45 = vpop.f32.mrb[7].mxu0  ;;  %v1123_v46 = vpop.f32.mrb[7].mxu1 }
 0x284   : > { %1255 = vst [vmem:[%s2043_s29 + $0x28] sm:$0xff] %v1191_v39  ;;  %1287 = vst [vmem:[%s2043_s29 + $0x128] sm:$0xff] %v1223_v40  ;;  %v1193_v47 = vmax.f32 %v1043_v45, 0.0  ;;  %v1225_v48 = vmax.f32 %v1123_v46, 0.0 }
 0x285   : > { %1256 = vst [vmem:[%s2043_s29 + $0x30] sm:$0xff] %v1192_v43  ;;  %1288 = vst [vmem:[%s2043_s29 + $0x130] sm:$0xff] %v1224_v44 }
 0x286   : > { %1257 = vst [vmem:[%s2043_s29 + $0x38] sm:$0xff] %v1193_v47  ;;  %1289 = vst [vmem:[%s2043_s29 + $0x138] sm:$0xff] %v1225_v48 }
 0x288   : > { %v1047_v49 = vpop.f32.mrb[8].mxu0  ;;  %v1127_v50 = vpop.f32.mrb[8].mxu1 }
 0x289   : > { %v1194_v51 = vmax.f32 %v1047_v49, 0.0  ;;  %v1226_v52 = vmax.f32 %v1127_v50, 0.0  ;;  %v1049_v53 = vpop.f32.mrb[9].mxu0  ;;  %v1129_v54 = vpop.f32.mrb[9].mxu1 }
 0x28a   : > { %v1195_v55 = vmax.f32 %v1049_v53, 0.0  ;;  %v1227_v56 = vmax.f32 %v1129_v54, 0.0  ;;  %v1051_v57 = vpop.f32.mrb[10].mxu0  ;;  %v1131_v58 = vpop.f32.mrb[10].mxu1 }
 0x28b   : > { %1258 = vst [vmem:[%s2043_s29 + $0x40] sm:$0xff] %v1194_v51  ;;  %1290 = vst [vmem:[%s2043_s29 + $0x140] sm:$0xff] %v1226_v52  ;;  %v1196_v59 = vmax.f32 %v1051_v57, 0.0  ;;  %v1228_v60 = vmax.f32 %v1131_v58, 0.0  ;;  %v1053_v61 = vpop.f32.mrb[11].mxu0  ;;  %v1133_v62 = vpop.f32.mrb[11].mxu1 }
 0x28c   : > { %1259 = vst [vmem:[%s2043_s29 + $0x48] sm:$0xff] %v1195_v55  ;;  %1291 = vst [vmem:[%s2043_s29 + $0x148] sm:$0xff] %v1227_v56  ;;  %v1197_v63 = vmax.f32 %v1053_v61, 0.0  ;;  %v1229_v0 = vmax.f32 %v1133_v62, 0.0 }
 0x28d   : > { %1260 = vst [vmem:[%s2043_s29 + $0x50] sm:$0xff] %v1196_v59  ;;  %1292 = vst [vmem:[%s2043_s29 + $0x150] sm:$0xff] %v1228_v60 }
 0x28e   : > { %1261 = vst [vmem:[%s2043_s29 + $0x58] sm:$0xff] %v1197_v63  ;;  %1293 = vst [vmem:[%s2043_s29 + $0x158] sm:$0xff] %v1229_v0 }
 0x290   : > { %v1057_v1 = vpop.f32.mrb[12].mxu0  ;;  %v1137_v2 = vpop.f32.mrb[12].mxu1 }
 0x291   : > { %v1198_v3 = vmax.f32 %v1057_v1, 0.0  ;;  %v1230_v4 = vmax.f32 %v1137_v2, 0.0  ;;  %v1059_v5 = vpop.f32.mrb[13].mxu0  ;;  %v1139_v6 = vpop.f32.mrb[13].mxu1 }
 0x292   : > { %v1199_v7 = vmax.f32 %v1059_v5, 0.0  ;;  %v1231_v8 = vmax.f32 %v1139_v6, 0.0  ;;  %v1061_v9 = vpop.f32.mrb[14].mxu0  ;;  %v1141_v10 = vpop.f32.mrb[14].mxu1 }
 0x293   : > { %1262 = vst [vmem:[%s2043_s29 + $0x60] sm:$0xff] %v1198_v3  ;;  %1294 = vst [vmem:[%s2043_s29 + $0x160] sm:$0xff] %v1230_v4  ;;  %v1200_v11 = vmax.f32 %v1061_v9, 0.0  ;;  %v1232_v12 = vmax.f32 %v1141_v10, 0.0  ;;  %v1063_v13 = vpop.f32.mrb[15].mxu0  ;;  %v1143_v14 = vpop.f32.mrb[15].mxu1 }
 0x294   : > { %1263 = vst [vmem:[%s2043_s29 + $0x68] sm:$0xff] %v1199_v7  ;;  %1295 = vst [vmem:[%s2043_s29 + $0x168] sm:$0xff] %v1231_v8  ;;  %v1201_v15 = vmax.f32 %v1063_v13, 0.0  ;;  %v1233_v16 = vmax.f32 %v1143_v14, 0.0 }
 0x295   : > { %1264 = vst [vmem:[%s2043_s29 + $0x70] sm:$0xff] %v1200_v11  ;;  %1296 = vst [vmem:[%s2043_s29 + $0x170] sm:$0xff] %v1232_v12 }
 0x296   : > { %1265 = vst [vmem:[%s2043_s29 + $0x78] sm:$0xff] %v1201_v15  ;;  %1297 = vst [vmem:[%s2043_s29 + $0x178] sm:$0xff] %v1233_v16 }
 0x298   : > { %v1067_v17 = vpop.f32.mrb[16].mxu0  ;;  %v1147_v18 = vpop.f32.mrb[16].mxu1 }
 0x299   : > { %v1202_v19 = vmax.f32 %v1067_v17, 0.0  ;;  %v1234_v20 = vmax.f32 %v1147_v18, 0.0  ;;  %v1069_v21 = vpop.f32.mrb[17].mxu0  ;;  %v1149_v22 = vpop.f32.mrb[17].mxu1  ;;  %v1339_v17 = vld [vmem:[%s2043_s29] sm:$0xff] (%p2001_p9)  ;;  %v1341_v18 = vld [vmem:[%s2043_s29 + $0x8] sm:$0xff] (%p2001_p9) }
 0x29a   : > { %v1203_v23 = vmax.f32 %v1069_v21, 0.0  ;;  %v1235_v24 = vmax.f32 %v1149_v22, 0.0  ;;  %v1071_v25 = vpop.f32.mrb[18].mxu0  ;;  %v1151_v26 = vpop.f32.mrb[18].mxu1  ;;  %v1347_v21 = vld [vmem:[%s2043_s29 + $0x20] sm:$0xff] (%p2001_p9)  ;;  %v1349_v22 = vld [vmem:[%s2043_s29 + $0x28] sm:$0xff] (%p2001_p9)  ;;  %1340 = vst [vmem:[%s2247_s16] sm:$0xff] (%p2001_p9), %v1339_v17 }
 0x29b   : > { %1266 = vst [vmem:[%s2043_s29 + $0x80] sm:$0xff] %v1202_v19  ;;  %1298 = vst [vmem:[%s2043_s29 + $0x180] sm:$0xff] %v1234_v20  ;;  %v1204_v27 = vmax.f32 %v1071_v25, 0.0  ;;  %v1236_v28 = vmax.f32 %v1151_v26, 0.0  ;;  %v1073_v29 = vpop.f32.mrb[19].mxu0  ;;  %v1153_v30 = vpop.f32.mrb[19].mxu1 }
 0x29c   : > { %1267 = vst [vmem:[%s2043_s29 + $0x88] sm:$0xff] %v1203_v23  ;;  %1299 = vst [vmem:[%s2043_s29 + $0x188] sm:$0xff] %v1235_v24  ;;  %v1205_v31 = vmax.f32 %v1073_v29, 0.0  ;;  %v1237_v32 = vmax.f32 %v1153_v30, 0.0  ;;  %v1343_v19 = vld [vmem:[%s2043_s29 + $0x10] sm:$0xff] (%p2001_p9)  ;;  %v1345_v20 = vld [vmem:[%s2043_s29 + $0x18] sm:$0xff] (%p2001_p9) }
 0x29d   : > { %1268 = vst [vmem:[%s2043_s29 + $0x90] sm:$0xff] %v1204_v27  ;;  %1300 = vst [vmem:[%s2043_s29 + $0x190] sm:$0xff] %v1236_v28  ;;  %v1351_v23 = vld [vmem:[%s2043_s29 + $0x30] sm:$0xff] (%p2001_p9)  ;;  %v1353_v24 = vld [vmem:[%s2043_s29 + $0x38] sm:$0xff] (%p2001_p9) }
 0x29e   : > { %1269 = vst [vmem:[%s2043_s29 + $0x98] sm:$0xff] %v1205_v31  ;;  %1301 = vst [vmem:[%s2043_s29 + $0x198] sm:$0xff] %v1237_v32  ;;  %v1355_v25 = vld [vmem:[%s2043_s29 + $0x40] sm:$0xff] (%p2001_p9)  ;;  %v1357_v26 = vld [vmem:[%s2043_s29 + $0x48] sm:$0xff] (%p2001_p9) }
 0x29f   : > { %v1359_v27 = vld [vmem:[%s2043_s29 + $0x50] sm:$0xff] (%p2001_p9)  ;;  %v1361_v28 = vld [vmem:[%s2043_s29 + $0x58] sm:$0xff] (%p2001_p9)  ;;  %v1363_v29 = vld [vmem:[%s2043_s29 + $0x60] sm:$0xff] (%p2001_p9)  ;;  %1342 = vst [vmem:[%s2247_s16 + $0x8] sm:$0xff] (%p2001_p9), %v1341_v18 }
 0x2a0   : > { %v1077_v33 = vpop.f32.mrb[20].mxu0  ;;  %v1157_v34 = vpop.f32.mrb[20].mxu1  ;;  %v1365_v30 = vld [vmem:[%s2043_s29 + $0x68] sm:$0xff] (%p2001_p9)  ;;  %v1367_v31 = vld [vmem:[%s2043_s29 + $0x70] sm:$0xff] (%p2001_p9)  ;;  %1344 = vst [vmem:[%s2247_s16 + $0x30] sm:$0xff] (%p2001_p9), %v1343_v19  ;;  %1346 = vst [vmem:[%s2247_s16 + $0x38] sm:$0xff] (%p2001_p9), %v1345_v20 }
 0x2a1   : > { %v1206_v35 = vmax.f32 %v1077_v33, 0.0  ;;  %v1238_v36 = vmax.f32 %v1157_v34, 0.0  ;;  %v1079_v37 = vpop.f32.mrb[21].mxu0  ;;  %v1159_v38 = vpop.f32.mrb[21].mxu1  ;;  %1348 = vst [vmem:[%s2247_s16 + $0x60] sm:$0xff] (%p2001_p9), %v1347_v21  ;;  %1350 = vst [vmem:[%s2247_s16 + $0x68] sm:$0xff] (%p2001_p9), %v1349_v22 }
 0x2a2   : > { %v1207_v39 = vmax.f32 %v1079_v37, 0.0  ;;  %v1239_v40 = vmax.f32 %v1159_v38, 0.0  ;;  %v1081_v41 = vpop.f32.mrb[22].mxu0  ;;  %v1161_v42 = vpop.f32.mrb[22].mxu1  ;;  %1352 = vst [vmem:[%s2247_s16 + $0x90] sm:$0xff] (%p2001_p9), %v1351_v23  ;;  %1354 = vst [vmem:[%s2247_s16 + $0x98] sm:$0xff] (%p2001_p9), %v1353_v24 }
 0x2a3   : > { %1270 = vst [vmem:[%s2043_s29 + $0xa0] sm:$0xff] %v1206_v35  ;;  %1302 = vst [vmem:[%s2043_s29 + $0x1a0] sm:$0xff] %v1238_v36  ;;  %v1208_v43 = vmax.f32 %v1081_v41, 0.0  ;;  %v1240_v44 = vmax.f32 %v1161_v42, 0.0  ;;  %v1083_v45 = vpop.f32.mrb[23].mxu0  ;;  %v1163_v46 = vpop.f32.mrb[23].mxu1 }
 0x2a4   : > { %1271 = vst [vmem:[%s2043_s29 + $0xa8] sm:$0xff] %v1207_v39  ;;  %1303 = vst [vmem:[%s2043_s29 + $0x1a8] sm:$0xff] %v1239_v40  ;;  %v1209_v47 = vmax.f32 %v1083_v45, 0.0  ;;  %v1241_v48 = vmax.f32 %v1163_v46, 0.0  ;;  %v1369_v32 = vld [vmem:[%s2043_s29 + $0x78] sm:$0xff] (%p2001_p9)  ;;  %v1371_v33 = vld [vmem:[%s2043_s29 + $0x80] sm:$0xff] (%p2001_p9) }
 0x2a5   : > { %1272 = vst [vmem:[%s2043_s29 + $0xb0] sm:$0xff] %v1208_v43  ;;  %1304 = vst [vmem:[%s2043_s29 + $0x1b0] sm:$0xff] %v1240_v44  ;;  %v1373_v34 = vld [vmem:[%s2043_s29 + $0x88] sm:$0xff] (%p2001_p9)  ;;  %v1375_v35 = vld [vmem:[%s2043_s29 + $0x90] sm:$0xff] (%p2001_p9) }
 0x2a6   : > { %1273 = vst [vmem:[%s2043_s29 + $0xb8] sm:$0xff] %v1209_v47  ;;  %1305 = vst [vmem:[%s2043_s29 + $0x1b8] sm:$0xff] %v1241_v48  ;;  %v1377_v36 = vld [vmem:[%s2043_s29 + $0x98] sm:$0xff] (%p2001_p9) }
 0x2a7   : > { %1356 = vst [vmem:[%s2247_s16 + $0xc0] sm:$0xff] (%p2001_p9), %v1355_v25  ;;  %1358 = vst [vmem:[%s2247_s16 + $0xc8] sm:$0xff] (%p2001_p9), %v1357_v26 }
 0x2a8   : > { %v1087_v49 = vpop.f32.mrb[24].mxu0  ;;  %v1167_v50 = vpop.f32.mrb[24].mxu1  ;;  %1360 = vst [vmem:[%s2247_s16 + $0xf0] sm:$0xff] (%p2001_p9), %v1359_v27  ;;  %1362 = vst [vmem:[%s2247_s16 + $0xf8] sm:$0xff] (%p2001_p9), %v1361_v28 }
 0x2a9   : > { %v1210_v51 = vmax.f32 %v1087_v49, 0.0  ;;  %v1242_v52 = vmax.f32 %v1167_v50, 0.0  ;;  %v1089_v53 = vpop.f32.mrb[25].mxu0  ;;  %v1169_v54 = vpop.f32.mrb[25].mxu1  ;;  %1364 = vst [vmem:[%s2247_s16 + $0x120] sm:$0xff] (%p2001_p9), %v1363_v29  ;;  %1366 = vst [vmem:[%s2247_s16 + $0x128] sm:$0xff] (%p2001_p9), %v1365_v30 }
 0x2aa   : > { %v1211_v55 = vmax.f32 %v1089_v53, 0.0  ;;  %v1243_v56 = vmax.f32 %v1169_v54, 0.0  ;;  %v1091_v57 = vpop.f32.mrb[26].mxu0  ;;  %v1171_v58 = vpop.f32.mrb[26].mxu1  ;;  %1368 = vst [vmem:[%s2247_s16 + $0x150] sm:$0xff] (%p2001_p9), %v1367_v31  ;;  %1370 = vst [vmem:[%s2247_s16 + $0x158] sm:$0xff] (%p2001_p9), %v1369_v32 }
 0x2ab   : > { %1274 = vst [vmem:[%s2043_s29 + $0xc0] sm:$0xff] %v1210_v51  ;;  %1306 = vst [vmem:[%s2043_s29 + $0x1c0] sm:$0xff] %v1242_v52  ;;  %v1212_v59 = vmax.f32 %v1091_v57, 0.0  ;;  %v1244_v60 = vmax.f32 %v1171_v58, 0.0  ;;  %v1093_v61 = vpop.f32.mrb[27].mxu0  ;;  %v1173_v62 = vpop.f32.mrb[27].mxu1 }
 0x2ac   : > { %1275 = vst [vmem:[%s2043_s29 + $0xc8] sm:$0xff] %v1211_v55  ;;  %1307 = vst [vmem:[%s2043_s29 + $0x1c8] sm:$0xff] %v1243_v56  ;;  %v1213_v63 = vmax.f32 %v1093_v61, 0.0  ;;  %v1245_v0 = vmax.f32 %v1173_v62, 0.0  ;;  %v1379_v37 = vld [vmem:[%s2043_s29 + $0xa0] sm:$0xff] (%p2001_p9)  ;;  %v1381_v38 = vld [vmem:[%s2043_s29 + $0xa8] sm:$0xff] (%p2001_p9) }
 0x2ad   : > { %1276 = vst [vmem:[%s2043_s29 + $0xd0] sm:$0xff] %v1212_v59  ;;  %1308 = vst [vmem:[%s2043_s29 + $0x1d0] sm:$0xff] %v1244_v60  ;;  %v1383_v39 = vld [vmem:[%s2043_s29 + $0xb0] sm:$0xff] (%p2001_p9)  ;;  %v1385_v40 = vld [vmem:[%s2043_s29 + $0xb8] sm:$0xff] (%p2001_p9) }
 0x2ae   : > { %1277 = vst [vmem:[%s2043_s29 + $0xd8] sm:$0xff] %v1213_v63  ;;  %1309 = vst [vmem:[%s2043_s29 + $0x1d8] sm:$0xff] %v1245_v0  ;;  %v1403_v49 = vld [vmem:[%s2043_s29 + $0x100] sm:$0xff] (%p2001_p9)  ;;  %v1405_v50 = vld [vmem:[%s2043_s29 + $0x108] sm:$0xff] (%p2001_p9) }
 0x2af   : > { %1372 = vst [vmem:[%s2247_s16 + $0x180] sm:$0xff] (%p2001_p9), %v1371_v33  ;;  %1374 = vst [vmem:[%s2247_s16 + $0x188] sm:$0xff] (%p2001_p9), %v1373_v34  ;;  %v1407_v51 = vld [vmem:[%s2043_s29 + $0x110] sm:$0xff] (%p2001_p9)  ;;  %v1409_v52 = vld [vmem:[%s2043_s29 + $0x118] sm:$0xff] (%p2001_p9) }
 0x2b0   : > { %v1097_v1 = vpop.f32.mrb[28].mxu0  ;;  %v1177_v2 = vpop.f32.mrb[28].mxu1  ;;  %1320 = sbr.rel (!%p2001_p9) target bundleno = 715 (0x2cb), region = 78  ;;  %1376 = vst [vmem:[%s2247_s16 + $0x1b0] sm:$0xff] (%p2001_p9), %v1375_v35  ;;  %1378 = vst [vmem:[%s2247_s16 + $0x1b8] sm:$0xff] (%p2001_p9), %v1377_v36  ;;  %v1411_v53 = vld [vmem:[%s2043_s29 + $0x120] sm:$0xff] (%p2001_p9) }
 0x2b1   : > { %v1214_v3 = vmax.f32 %v1097_v1, 0.0  ;;  %v1246_v4 = vmax.f32 %v1177_v2, 0.0  ;;  %v1099_v5 = vpop.f32.mrb[29].mxu0  ;;  %v1179_v6 = vpop.f32.mrb[29].mxu1  ;;  %1380 = vst [vmem:[%s2247_s16 + $0x1e0] sm:$0xff] (%p2001_p9), %v1379_v37  ;;  %1382 = vst [vmem:[%s2247_s16 + $0x1e8] sm:$0xff] (%p2001_p9), %v1381_v38 }
 0x2b2   : > { %v1215_v7 = vmax.f32 %v1099_v5, 0.0  ;;  %v1247_v8 = vmax.f32 %v1179_v6, 0.0  ;;  %v1101_v9 = vpop.f32.mrb[30].mxu0  ;;  %v1181_v10 = vpop.f32.mrb[30].mxu1  ;;  %1384 = vst [vmem:[%s2247_s16 + $0x210] sm:$0xff] (%p2001_p9), %v1383_v39  ;;  %1386 = vst [vmem:[%s2247_s16 + $0x218] sm:$0xff] (%p2001_p9), %v1385_v40 }
 0x2b3   : > { %1278 = vst [vmem:[%s2043_s29 + $0xe0] sm:$0xff] %v1214_v3  ;;  %1310 = vst [vmem:[%s2043_s29 + $0x1e0] sm:$0xff] %v1246_v4  ;;  %v1216_v11 = vmax.f32 %v1101_v9, 0.0  ;;  %v1248_v12 = vmax.f32 %v1181_v10, 0.0  ;;  %v1103_v13 = vpop.f32.mrb[31].mxu0  ;;  %v1183_v14 = vpop.f32.mrb[31].mxu1 }
 0x2b4   : > { %1279 = vst [vmem:[%s2043_s29 + $0xe8] sm:$0xff] %v1215_v7  ;;  %1311 = vst [vmem:[%s2043_s29 + $0x1e8] sm:$0xff] %v1247_v8  ;;  %v1217_v15 = vmax.f32 %v1103_v13, 0.0  ;;  %v1249_v16 = vmax.f32 %v1183_v14, 0.0  ;;  %v1387_v41 = vld [vmem:[%s2043_s29 + $0xc0] sm:$0xff] (%p2001_p9)  ;;  %v1389_v42 = vld [vmem:[%s2043_s29 + $0xc8] sm:$0xff] (%p2001_p9) }
 0x2b5   : > { %1280 = vst [vmem:[%s2043_s29 + $0xf0] sm:$0xff] %v1216_v11  ;;  %1312 = vst [vmem:[%s2043_s29 + $0x1f0] sm:$0xff] %v1248_v12  ;;  %v1391_v43 = vld [vmem:[%s2043_s29 + $0xd0] sm:$0xff] (%p2001_p9)  ;;  %v1393_v44 = vld [vmem:[%s2043_s29 + $0xd8] sm:$0xff] (%p2001_p9) }
 0x2b6   : > { %1281 = vst [vmem:[%s2043_s29 + $0xf8] sm:$0xff] %v1217_v15  ;;  %1313 = vst [vmem:[%s2043_s29 + $0x1f8] sm:$0xff] %v1249_v16  ;;  %v1413_v54 = vld [vmem:[%s2043_s29 + $0x128] sm:$0xff] (%p2001_p9)  ;;  %v1415_v55 = vld [vmem:[%s2043_s29 + $0x130] sm:$0xff] (%p2001_p9) }
 0x2b7   : > { %1388 = vst [vmem:[%s2247_s16 + $0x240] sm:$0xff] %v1387_v41  ;;  %1390 = vst [vmem:[%s2247_s16 + $0x248] sm:$0xff] %v1389_v42  ;;  %v1417_v56 = vld [vmem:[%s2043_s29 + $0x138] sm:$0xff]  ;;  %v1419_v57 = vld [vmem:[%s2043_s29 + $0x140] sm:$0xff] }
 0x2b8   : > { %1392 = vst [vmem:[%s2247_s16 + $0x270] sm:$0xff] %v1391_v43  ;;  %1394 = vst [vmem:[%s2247_s16 + $0x278] sm:$0xff] %v1393_v44  ;;  %v1421_v58 = vld [vmem:[%s2043_s29 + $0x148] sm:$0xff]  ;;  %v1423_v59 = vld [vmem:[%s2043_s29 + $0x150] sm:$0xff] }
 0x2b9   : > { %1404 = vst [vmem:[%s2247_s16 + $0x300] sm:$0xff] %v1403_v49  ;;  %1406 = vst [vmem:[%s2247_s16 + $0x308] sm:$0xff] %v1405_v50  ;;  %v1425_v60 = vld [vmem:[%s2043_s29 + $0x158] sm:$0xff]  ;;  %v1427_v61 = vld [vmem:[%s2043_s29 + $0x160] sm:$0xff] }
 0x2ba   : > { %v1395_v45 = vld [vmem:[%s2043_s29 + $0xe0] sm:$0xff]  ;;  %1408 = vst [vmem:[%s2247_s16 + $0x330] sm:$0xff] %v1407_v51  ;;  %1410 = vst [vmem:[%s2247_s16 + $0x338] sm:$0xff] %v1409_v52  ;;  %v1429_v62 = vld [vmem:[%s2043_s29 + $0x168] sm:$0xff] }
 0x2bb   : > { %v1397_v46 = vld [vmem:[%s2043_s29 + $0xe8] sm:$0xff]  ;;  %1396 = vst [vmem:[%s2247_s16 + $0x2a0] sm:$0xff] %v1395_v45  ;;  %1412 = vst [vmem:[%s2247_s16 + $0x360] sm:$0xff] %v1411_v53  ;;  %v1431_v63 = vld [vmem:[%s2043_s29 + $0x170] sm:$0xff] }
 0x2bc   : > { %1398 = vst [vmem:[%s2247_s16 + $0x2a8] sm:$0xff] %v1397_v46  ;;  %v1399_v47 = vld [vmem:[%s2043_s29 + $0xf0] sm:$0xff]  ;;  %1414 = vst [vmem:[%s2247_s16 + $0x368] sm:$0xff] %v1413_v54  ;;  %v1433_v0 = vld [vmem:[%s2043_s29 + $0x178] sm:$0xff] }
 0x2bd   : > { %v1401_v48 = vld [vmem:[%s2043_s29 + $0xf8] sm:$0xff]  ;;  %1400 = vst [vmem:[%s2247_s16 + $0x2d0] sm:$0xff] %v1399_v47  ;;  %1416 = vst [vmem:[%s2247_s16 + $0x390] sm:$0xff] %v1415_v55  ;;  %v1435_v1 = vld [vmem:[%s2043_s29 + $0x180] sm:$0xff] }
 0x2be   : > { %1402 = vst [vmem:[%s2247_s16 + $0x2d8] sm:$0xff] %v1401_v48  ;;  %1418 = vst [vmem:[%s2247_s16 + $0x398] sm:$0xff] %v1417_v56  ;;  %v1437_v2 = vld [vmem:[%s2043_s29 + $0x188] sm:$0xff]  ;;  %v1439_v3 = vld [vmem:[%s2043_s29 + $0x190] sm:$0xff] }
 0x2bf   : > { %1420 = vst [vmem:[%s2247_s16 + $0x3c0] sm:$0xff] %v1419_v57  ;;  %1422 = vst [vmem:[%s2247_s16 + $0x3c8] sm:$0xff] %v1421_v58  ;;  %v1441_v4 = vld [vmem:[%s2043_s29 + $0x198] sm:$0xff]  ;;  %v1443_v5 = vld [vmem:[%s2043_s29 + $0x1a0] sm:$0xff] }
 0x2c0   : > { %1424 = vst [vmem:[%s2247_s16 + $0x3f0] sm:$0xff] %v1423_v59  ;;  %1426 = vst [vmem:[%s2247_s16 + $0x3f8] sm:$0xff] %v1425_v60  ;;  %v1445_v6 = vld [vmem:[%s2043_s29 + $0x1a8] sm:$0xff]  ;;  %v1447_v7 = vld [vmem:[%s2043_s29 + $0x1b0] sm:$0xff] }
 0x2c1   : > { %1428 = vst [vmem:[%s2247_s16 + $0x420] sm:$0xff] %v1427_v61  ;;  %1430 = vst [vmem:[%s2247_s16 + $0x428] sm:$0xff] %v1429_v62  ;;  %v1449_v8 = vld [vmem:[%s2043_s29 + $0x1b8] sm:$0xff]  ;;  %v1451_v9 = vld [vmem:[%s2043_s29 + $0x1c0] sm:$0xff] }
 0x2c2   : > { %1432 = vst [vmem:[%s2247_s16 + $0x450] sm:$0xff] %v1431_v63  ;;  %1434 = vst [vmem:[%s2247_s16 + $0x458] sm:$0xff] %v1433_v0  ;;  %v1453_v10 = vld [vmem:[%s2043_s29 + $0x1c8] sm:$0xff]  ;;  %v1455_v11 = vld [vmem:[%s2043_s29 + $0x1d0] sm:$0xff] }
 0x2c3   : > { %1436 = vst [vmem:[%s2247_s16 + $0x480] sm:$0xff] %v1435_v1  ;;  %1438 = vst [vmem:[%s2247_s16 + $0x488] sm:$0xff] %v1437_v2  ;;  %v1457_v12 = vld [vmem:[%s2043_s29 + $0x1d8] sm:$0xff]  ;;  %v1459_v13 = vld [vmem:[%s2043_s29 + $0x1e0] sm:$0xff] }
 0x2c4   : > { %1440 = vst [vmem:[%s2247_s16 + $0x4b0] sm:$0xff] %v1439_v3  ;;  %1442 = vst [vmem:[%s2247_s16 + $0x4b8] sm:$0xff] %v1441_v4  ;;  %v1461_v14 = vld [vmem:[%s2043_s29 + $0x1e8] sm:$0xff]  ;;  %v1463_v15 = vld [vmem:[%s2043_s29 + $0x1f0] sm:$0xff] }
 0x2c5   : > { %1444 = vst [vmem:[%s2247_s16 + $0x4e0] sm:$0xff] %v1443_v5  ;;  %1446 = vst [vmem:[%s2247_s16 + $0x4e8] sm:$0xff] %v1445_v6  ;;  %v1465_v16 = vld [vmem:[%s2043_s29 + $0x1f8] sm:$0xff] }
 0x2c6   : > { %1448 = vst [vmem:[%s2247_s16 + $0x510] sm:$0xff] %v1447_v7  ;;  %1450 = vst [vmem:[%s2247_s16 + $0x518] sm:$0xff] %v1449_v8 }
 0x2c7   : > { %1452 = vst [vmem:[%s2247_s16 + $0x540] sm:$0xff] %v1451_v9  ;;  %1454 = vst [vmem:[%s2247_s16 + $0x548] sm:$0xff] %v1453_v10 }
 0x2c8   : > { %1456 = vst [vmem:[%s2247_s16 + $0x570] sm:$0xff] %v1455_v11  ;;  %1458 = vst [vmem:[%s2247_s16 + $0x578] sm:$0xff] %v1457_v12 }
 0x2c9   : > { %1460 = vst [vmem:[%s2247_s16 + $0x5a0] sm:$0xff] %v1459_v13  ;;  %1462 = vst [vmem:[%s2247_s16 + $0x5a8] sm:$0xff] %v1461_v14 }
 0x2ca   : > { %1464 = vst [vmem:[%s2247_s16 + $0x5d0] sm:$0xff] %v1463_v15  ;;  %1466 = vst [vmem:[%s2247_s16 + $0x5d8] sm:$0xff] %v1465_v16 }
 0x2cb PF: > { %s13_s20 = sadd.s32 1, %s1910_s20   ;;  %s2398_s12 = smov %s1882_s13 }
 0x2cc   : > { %p10_p1 = scmp.ge.s32.totalorder %s13_s20, 8   ;;  %s2399_s13 = smov %s2009_s5 }
 0x2cd   : > { %s2400_s14 = smov %s1890_s15  ;;  %s2401_s15 = smov %s2006_s4 }
 0x2ce   : > { %s2402_s16 = smov %s1902_s18  ;;  %s2403_s17 = smov %s1906_s19 }
 0x2cf   : > { %s2404_s18 = smov %s2407_s21  ;;  %s2405_s19 = smov %s2411_s22 }
 0x2d0   :  { %12 = sbr.rel (!%p10_p1) target bundleno = 5 (0x5), region = 133 }

</bundles_post_ra>
